<compile_context>
chip_gen: v7x
topology: tpu7x:2x2x1
jax: 0.10.0
libtpu: 0.0.40
codegen_flags: <defaults>
</compile_context>

<pallas_src>
import functools

import jax
import jax.numpy as jnp
from jax.experimental import pallas as pl
from jax.experimental.pallas import tpu as pltpu


def _round_up(a, m):
    return ((a + m - 1) // m) * m


def _layernorm_channels_kernel(x_ref, w_ref, b_ref, o_ref, *, eps, inv_c):
    # x_ref: (C, TS) block; normalize each lane (spatial position) over C.
    # w_ref / b_ref: (C, 1) affine params, broadcast along lanes.
    x = x_ref[...].astype(jnp.float32)                 # (C, TS)

    # Fused single pass: E[x] and E[x^2] (f32 accumulation).
    s1 = jnp.sum(x, axis=0, keepdims=True)             # (1, TS)
    s2 = jnp.sum(x * x, axis=0, keepdims=True)         # (1, TS)
    mean = s1 * inv_c
    var = s2 * inv_c - mean * mean                     # biased var (torch LayerNorm)
    inv = jax.lax.rsqrt(var + eps)

    # Affine params loaded once per block, broadcast along lanes.
    w = w_ref[...].astype(jnp.float32)                 # (C, 1)
    b = b_ref[...].astype(jnp.float32)                 # (C, 1)

    o_ref[...] = ((x - mean) * inv * w + b).astype(o_ref.dtype)


def _layernorm_channels(x3, weight, bias, eps, *, tile_s, vmem_limit_bytes):
    """x3: (B, C, S); LayerNorm over the C axis. S need NOT divide tile_s."""
    B, C, S = x3.shape
    itemsize = jnp.dtype(x3.dtype).itemsize

    w2 = weight.reshape(C, 1)
    b2 = bias.reshape(C, 1)

    kernel = functools.partial(_layernorm_channels_kernel, eps=eps, inv_c=1.0 / C)

    cost = pl.CostEstimate(
        flops=8 * B * C * S,
        transcendentals=B * S,
        bytes_accessed=2 * B * C * S * itemsize + 2 * C * 4,
    )

    return pl.pallas_call(
        kernel,
        out_shape=jax.ShapeDtypeStruct((B, C, S), x3.dtype),
        grid_spec=pltpu.PrefetchScalarGridSpec(
            num_scalar_prefetch=0,
            grid=(B, pl.cdiv(S, tile_s)),
            in_specs=[
                pl.BlockSpec((pl.Squeezed(), C, tile_s), lambda b, s: (b, 0, s)),
                pl.BlockSpec((C, 1), lambda b, s: (0, 0)),
                pl.BlockSpec((C, 1), lambda b, s: (0, 0)),
            ],
            out_specs=pl.BlockSpec((pl.Squeezed(), C, tile_s),
                                   lambda b, s: (b, 0, s)),
        ),
        compiler_params=pltpu.CompilerParams(
            dimension_semantics=("parallel", "parallel"),
            vmem_limit_bytes=vmem_limit_bytes),
        cost_estimate=cost,
    )(x3, w2, b2)


def layernorm_ncdhw(x, weight, bias, eps, *,
                    vmem_budget_bytes=8 << 20, max_tile_s=4096):
    """x: (B, C, D, H, W) -> LayerNorm over channel dim (per b,d,h,w position).

    Operates directly on the native NCDHW layout (no transposes, no padding):
    the tensor is viewed as (B, C, S) and tiled lane-dense along S; the ragged
    tail block (S % tile_s != 0) is masked on the store by Pallas.
    """
    B, C, D, H, W = x.shape
    S = D * H * W
    x3 = x.reshape(B, C, S)

    itemsize = jnp.dtype(x.dtype).itemsize
    # Per-lane VMEM cost: 2x in + 2x out pipelined blocks (native dtype) plus
    # in-kernel f32 intermediates (x, x*x, result) at ~12 bytes/channel/lane.
    per_lane_bytes = 4 * C * itemsize + 12 * C
    ts = vmem_budget_bytes // per_lane_bytes
    ts = min(ts, max_tile_s, _round_up(S, 128))
    ts = max(128, (ts // 128) * 128)

    # v7x megacore: make sure there are >= 2 grid steps on a "parallel" axis
    # when B == 1 so both TensorCores get work.
    if B == 1 and S > 128 and pl.cdiv(S, ts) < 2:
        ts = max(128, _round_up((S + 1) // 2, 128))

    # Explicit VMEM limit matching the real footprint (+ headroom), clipped to
    # a range that is safe on v5e (16 MiB scoped default) and v7x (64 MiB VMEM).
    buf_bytes = 4 * C * ts * itemsize          # pipelined in/out blocks
    tmp_bytes = 3 * C * ts * 4                 # f32 intermediates inside kernel
    vmem_limit = buf_bytes + tmp_bytes + (4 << 20)
    vmem_limit = int(min(max(vmem_limit, 12 << 20), 32 << 20))

    y3 = _layernorm_channels(x3, weight, bias, eps,
                             tile_s=ts, vmem_limit_bytes=vmem_limit)
    return y3.reshape(B, C, D, H, W)


def _reference_layernorm_ncdhw(x, weight, bias, eps):
    # Pure-JAX reference mirroring the PyTorch module (rearrange -> LayerNorm).
    x_last = jnp.transpose(x, (0, 2, 3, 4, 1))
    mean = jnp.mean(x_last, axis=-1, keepdims=True)
    var = jnp.mean((x_last - mean) ** 2, axis=-1, keepdims=True)
    y_last = (x_last - mean) * jax.lax.rsqrt(var + eps) * weight + bias
    return jnp.transpose(y_last, (0, 4, 1, 2, 3))


if __name__ == "__main__":
    key = jax.random.PRNGKey(0)
    eps = 1e-6

    # Case 1: S = D*H*W is a multiple of 128 (no masked tail).
    B, C, D, H, W = 2, 32, 4, 8, 8
    k1, k2, k3, k4 = jax.random.split(key, 4)
    x = jax.random.normal(k1, (B, C, D, H, W), dtype=jnp.float32)
    weight = 1.0 + 0.05 * jax.random.normal(k2, (C,), dtype=jnp.float32)
    bias = 0.05 * jax.random.normal(k3, (C,), dtype=jnp.float32)

    y = layernorm_ncdhw(x, weight, bias, eps)
    jax.block_until_ready(y)
    ref = _reference_layernorm_ncdhw(x, weight, bias, eps)
    assert jnp.allclose(y, ref, atol=1e-4, rtol=1e-4), "mismatch vs reference (case 1)"

    # Case 2: ragged spatial extent + B=1 (exercises the masked tail block and
    # the >=2-grid-step split for v7x).
    B2, C2, D2, H2, W2 = 1, 32, 3, 8, 7  # S = 168, not a multiple of 128
    x2 = jax.random.normal(k4, (B2, C2, D2, H2, W2), dtype=jnp.float32)
    y2 = layernorm_ncdhw(x2, weight, bias, eps)
    jax.block_until_ready(y2)
    ref2 = _reference_layernorm_ncdhw(x2, weight, bias, eps)
    assert jnp.allclose(y2, ref2, atol=1e-4, rtol=1e-4), "mismatch vs reference (case 2)"

    print("KERNEL_OK")
</pallas_src>

<mosaic_0001>
module attributes {stable_mosaic.version = 11 : i64} {
  func.func @_layernorm_channels_kernel(%arg0: i32, %arg1: i32, %arg2: memref<1x32x256xf32, #tpu.memory_space<vmem>>, %arg3: memref<32x1xf32, #tpu.memory_space<vmem>>, %arg4: memref<32x1xf32, #tpu.memory_space<vmem>>, %arg5: memref<1x32x256xf32, #tpu.memory_space<vmem>>) attributes {dimension_semantics = [#tpu.dimension_semantics<parallel>, #tpu.dimension_semantics<parallel>], iteration_bounds = array<i64: 2, 1>, scalar_prefetch = 0 : i64, scratch_operands = 0 : i64, tpu.core_type = #tpu.core_type<tc>, window_params = [{transform_indices = @transform_0, window_bounds = array<i64: 1, 32, 256>}, {pipeline_mode = #tpu.pipeline_mode<synchronous>, transform_indices = @transform_1, window_bounds = array<i64: 32, 1>}, {pipeline_mode = #tpu.pipeline_mode<synchronous>, transform_indices = @transform_2, window_bounds = array<i64: 32, 1>}, {transform_indices = @transform_3, window_bounds = array<i64: 1, 32, 256>}]} {
    %c0 = arith.constant 0 : index
    %c0_0 = arith.constant 0 : index
    %c0_1 = arith.constant 0 : index
    %0 = vector.load %arg2[%c0, %c0_0, %c0_1] : memref<1x32x256xf32, #tpu.memory_space<vmem>>, vector<1x32x256xf32>
    %1 = vector.shape_cast %0 : vector<1x32x256xf32> to vector<32x256xf32>
    %cst = arith.constant dense<0.000000e+00> : vector<256xf32>
    %2 = vector.multi_reduction <add>, %1, %cst [0] : vector<32x256xf32> to vector<256xf32>
    %3 = vector.shape_cast %2 : vector<256xf32> to vector<1x256xf32>
    %4 = arith.mulf %1, %1 : vector<32x256xf32>
    %cst_2 = arith.constant dense<0.000000e+00> : vector<256xf32>
    %5 = vector.multi_reduction <add>, %4, %cst_2 [0] : vector<32x256xf32> to vector<256xf32>
    %6 = vector.shape_cast %5 : vector<256xf32> to vector<1x256xf32>
    %cst_3 = arith.constant 3.125000e-02 : f32
    %7 = vector.broadcast %cst_3 : f32 to vector<1x256xf32>
    %8 = arith.mulf %3, %7 : vector<1x256xf32>
    %cst_4 = arith.constant 3.125000e-02 : f32
    %9 = vector.broadcast %cst_4 : f32 to vector<1x256xf32>
    %10 = arith.mulf %6, %9 : vector<1x256xf32>
    %11 = arith.mulf %8, %8 : vector<1x256xf32>
    %12 = arith.subf %10, %11 : vector<1x256xf32>
    %cst_5 = arith.constant 9.99999997E-7 : f32
    %13 = vector.broadcast %cst_5 : f32 to vector<1x256xf32>
    %14 = arith.addf %12, %13 : vector<1x256xf32>
    %15 = math.rsqrt %14 : vector<1x256xf32>
    %c0_6 = arith.constant 0 : index
    %c0_7 = arith.constant 0 : index
    %16 = vector.load %arg3[%c0_6, %c0_7] : memref<32x1xf32, #tpu.memory_space<vmem>>, vector<32x1xf32>
    %c0_8 = arith.constant 0 : index
    %c0_9 = arith.constant 0 : index
    %17 = vector.load %arg4[%c0_8, %c0_9] : memref<32x1xf32, #tpu.memory_space<vmem>>, vector<32x1xf32>
    %18 = vector.broadcast %8 : vector<1x256xf32> to vector<32x256xf32>
    %19 = arith.subf %1, %18 : vector<32x256xf32>
    %20 = vector.broadcast %15 : vector<1x256xf32> to vector<32x256xf32>
    %21 = arith.mulf %19, %20 : vector<32x256xf32>
    %22 = vector.broadcast %16 : vector<32x1xf32> to vector<32x256xf32>
    %23 = arith.mulf %21, %22 : vector<32x256xf32>
    %24 = vector.broadcast %17 : vector<32x1xf32> to vector<32x256xf32>
    %25 = arith.addf %23, %24 : vector<32x256xf32>
    %c0_10 = arith.constant 0 : index
    %c0_11 = arith.constant 0 : index
    %c0_12 = arith.constant 0 : index
    %26 = vector.load %arg5[%c0_10, %c0_11, %c0_12] : memref<1x32x256xf32, #tpu.memory_space<vmem>>, vector<1x32x256xf32>
    %27 = vector.shape_cast %26 : vector<1x32x256xf32> to vector<32x256xf32>
    %28 = vector.shape_cast %25 : vector<32x256xf32> to vector<1x32x256xf32>
    tpu.vector_store %arg5[%c0_10, %c0_11, %c0_12], %28 {strides = array<i32>} : memref<1x32x256xf32, #tpu.memory_space<vmem>>, vector<1x32x256xf32>,
    return
  }
  func.func @transform_0(%arg0: i32, %arg1: i32) -> (i32, i32, i32) {
    %c0_i32 = arith.constant 0 : i32
    %c0_i32_0 = arith.constant 0 : i32
    return %arg0, %c0_i32, %arg1 : i32, i32, i32
  }
  func.func @transform_1(%arg0: i32, %arg1: i32) -> (i32, i32) {
    %c0_i32 = arith.constant 0 : i32
    %c0_i32_0 = arith.constant 0 : i32
    %c0_i32_1 = arith.constant 0 : i32
    return %c0_i32, %c0_i32_0 : i32, i32
  }
  func.func @transform_2(%arg0: i32, %arg1: i32) -> (i32, i32) {
    %c0_i32 = arith.constant 0 : i32
    %c0_i32_0 = arith.constant 0 : i32
    %c0_i32_1 = arith.constant 0 : i32
    return %c0_i32, %c0_i32_0 : i32, i32
  }
  func.func @transform_3(%arg0: i32, %arg1: i32) -> (i32, i32, i32) {
    %c0_i32 = arith.constant 0 : i32
    %c0_i32_0 = arith.constant 0 : i32
    return %arg0, %c0_i32, %arg1 : i32, i32, i32
  }
}

</mosaic_0001>

<bundles_post_ra>
// kernel: tpu_custom_call.1
= control target key start
LH: loop header
LB: loop body
LE: loop exit
PB: predicated region body
PF: predicated region fallthrough
CT: control target
= control target key end

     0   :  { %8 = vsyncpa [#allocation3], 0  ;;  %s956_s0 = inlined_call_operand.hbm [shape: f32[2,32,256], index: 0, kind: input, shape index: {}]   ;;  %s957_s1 = inlined_call_operand.vmem [shape: f32[32,1], index: 1, kind: input, shape index: {}]   ;;  %s958_s2 = inlined_call_operand.vmem [shape: f32[32,1], index: 2, kind: input, shape index: {}]   ;;  %s959_s3 = inlined_call_operand.hbm [shape: f32[2,32,256], index: 3, kind: output, shape index: {}]  }
   0x1   :  { %10 = vsyncpa [#allocation3 + $0x1], 0 }
   0x2   :  { %11 = vsyncpa [#allocation4], 0 }
   0x3   :  { %13 = vsyncpa [#allocation4 + $0x1], 0  ;;  %s695_s12 = smov 0   ;;  %s697_s13 = smov 0  }
   0x4   :  { %s699_s14 = smov 0   ;;  %s701_s15 = smov 0  }
   0x5   :  { %s703_s16 = smov 0   ;;  %s705_s17 = smov 0  }
   0x6 LB: > { %s464_s18 = sadd.s32 4294967295, %s666_s17   ;;  %s465_s19 = sadd.s32 4294967294, %s666_s17   ;;  %s666_s17 = sphi %s705_s17, %s19_s17   ;;  %s662_s16 = sphi %s703_s16, %s974_s16   ;;  %s658_s15 = sphi %s701_s15, %s973_s15   ;;  %s654_s14 = sphi %s699_s14, %s972_s14   ;;  %s650_s13 = sphi %s697_s13, %s971_s13   ;;  %s646_s12 = sphi %s695_s12, %s970_s12  }
   0x7   : > { %s31_s20 = sadd.s32 1, %s662_s16  ;;  %s40_s21 = sadd.s32 1, %s654_s14 }
   0x8   : > { %p33_p0 = scmp.ge.s32.totalorder %s31_s20, 2  ;;  %p47_p1 = scmp.ne.s32.totalorder %s654_s14, %s650_s13 }
   0x9   : > { %p48_p2 = scmp.eq.s32.totalorder %s666_s17, 0  ;;  %p53_p3 = scmp.ne.s32.totalorder %s650_s13, %s646_s12 }
   0xa   : > { %s976_s20 = smov (%p33_p0, %s31_s20), 0  ;;  %p54_p5 = scmp.eq.s32.totalorder %s464_s18, 0 }
   0xb   : > { %p736_p4 = por %p48_p2, %p47_p1  ;;  %s35_s23 = ssub.s32 %s662_s16, %s976_s20 }
   0xc   : > { %p121_p6 = scmp.eq.s32.totalorder %s464_s18, 1  ;;  %p38_p7 = scmp.eq.s32.totalorder %s35_s23, 0 }
   0xd   : > { %p742_p8 = por %p54_p5, %p53_p3  ;;  %p127_p10 = scmp.eq.s32.totalorder %s465_s19, 1 }
   0xe   : > { %p746_p9 = por %p121_p6, %p47_p1  ;;  %p493_p13 = scmp.lt.s32.totalorder %s666_s17, 2 }
   0xf   : > { %s751_s26 = scalar_select %p38_p7, %s654_s14, %s40_s21  }
  0x10   : > { %s963_s25 = scalar_select %p746_p9, 1, 0 }
  0x11   : > { %p753_p11 = por %p127_p10, %p53_p3  ;;  %s153_s28 = sand.u32 1, %s654_s14  }
  0x12   : > { %s468_s29 = sshll.u32 %s153_s28, 6  ;;  %s479_s30 = sshll.u32 %s662_s16, 10 }
  0x13   : > { %s964_s27 = scalar_select %p753_p11, 1, 0 }
  0x14   : > { %s764_s6 = scalar_lea.hbm %s956_s0, %s479_s30  ;;  %s157_s7 = scalar_lea.vmem [#allocation2], %s468_s29 }
  0x15   : > { %s166_s8 = sshll.u32 %s157_s7, 4  ;;  %p770_p0 = pnand %p493_p13, %p736_p4  ;;  %s766_s8 = int_to_ptr.vmem [resolvable:$true] %s166_s8 }
  0x16   : > { %s775_s10 = scalar_lea.sflag [#allocation3], %s153_s28  ;;  %s554_s11 = scalar_lea.hbm %s764_s6, 1024 }
  0x17   : > { %p555_p2 = scmp.ne.s32.totalorder %s764_s6, %s554_s11  ;;  %p556_p3 = pneg %p770_p0 }
  0x18   : > { %s559_s21 = scalar_lea.hbm %s956_s0, 2048  ;;  %p560_p4 = scmp.lt.u32.totalorder %s764_s6, %s956_s0 }
  0x19   : > { %p557_p5 = pnand %p556_p3, %p555_p2  ;;  %p561_p7 = scmp.lt.u32.totalorder %s559_s21, %s554_s11 }
  0x1a   : > { %p563_p13 = scmp.lt.u32.totalorder %s554_s11, %s764_s6 }
  0x1b   : > { %p558_p6 = pneg %p557_p5  ;;  %p562_p10 = por %p561_p7, %p560_p4 }
  0x1d   : > { %p564_p12 = por %p563_p13, %p562_p10 }
  0x1f   : > { %p565_p1 = pnand %p564_p12, %p558_p6 }
  0x21   : > { %568 = shalt.err (!%p565_p1)
}
  0x22   : > { %s569_s28 = scalar_lea.vmem %s766_s8, 1024  ;;  %s668_s29 = smov [#allocation2]  }
  0x23   : > { %p570_p2 = scmp.ne.s32.totalorder %s766_s8, %s569_s28  ;;  %s574_s30 = sshll.u32 %s668_s29, 4  ;;  %s575_s30 = int_to_ptr.vmem [resolvable:$false] %s574_s30 }
  0x24   : > { %s576_s4 = scalar_lea.vmem %s575_s30, 2048  ;;  %p577_p9 = scmp.lt.s32.totalorder %s766_s8, %s575_s30 }
  0x25   : > { %p572_p5 = pnand %p570_p2, %p556_p3  ;;  %p578_p4 = scmp.lt.s32.totalorder %s576_s4, %s569_s28 }
  0x27   : > { %p573_p11 = pneg %p572_p5  ;;  %p579_p7 = por %p578_p4, %p577_p9 }
  0x29   : > { %p580_p10 = pnand %p579_p7, %p573_p11 }
  0x2b   : > { %583 = shalt.err (!%p580_p10)
}
  0x2c   : > { %s669_s5 = smov 256   ;;  %s670_s7 = smov 16  }
  0x2d   : > { %488 = dma.hbm_to_vmem [thread:$0]  (!%p770_p0), %s764_s6, 1024, %s766_s8, %s775_s10, %s669_s5, %s669_s5, %s670_s7  }
  0x2e   : > { %p174_p12 = scmp.lt.s32.totalorder %s666_s17, 3  ;;  %p966_p1 = scmp.ge.s32.totalorder %s666_s17, 1 }
  0x30   : > { %p175_p3 = pnand %p966_p1, %p174_p12 }
  0x31   : > { %s807_s11 = sand.u32 (!%p175_p3), 1, %s650_s13  }
  0x32   : > { %178 = sbr.rel (%p175_p3) target bundleno = 218 (0xda), region = 32  ;;  %s472_s18 = sshll.u32 (!%p175_p3), %s807_s11, 6 }
  0x33   : > { %s181_s19 = scalar_lea.sflag (!%p175_p3), [#allocation3], %s807_s11  ;;  %s813_s21 = scalar_lea.vmem (!%p175_p3), [#allocation2], %s472_s18 }
  0x39   : > { %637 = dma.done.wait (%p742_p8), %s181_s19, 1024  }
  0x3a   : > { %639 = vsyncadd (%p742_p8), %s181_s19, 4294966272  ;;  %v671_v0 = vmov 0   ;;  %v275_v1 = vld [vmem:[%s957_s1 + $0x10] sm:$0xff]  ;;  %v273_v2 = vld [vmem:[%s957_s1] sm:$0xff]  ;;  %s480_s10 = sshll.u32 %s658_s15, 10  ;;  %s362_s23 = scalar_lea.sflag [#allocation4], %s807_s11 }
  0x3b   : > { %549 = vset.pattern.permute.xlu1 %v671_v0  ;;  %548 = vset.pattern.permute.xlu0 %v671_v0  ;;  %v276_v3 = vld [vmem:[%s957_s1 + $0x18] sm:$0xff]  ;;  %v274_v4 = vld [vmem:[%s957_s1 + $0x8] sm:$0xff]  ;;  %v277_v6 = vld [vmem:[%s958_s2] sm:$0xff]  ;;  %s907_s15 = scalar_lea.hbm %s959_s3, %s480_s10  ;;  %p967_p9 = scmp.ne.s32.totalorder %s963_s25, 0 }
  0x3c   : > { %309 = vperm.xlu1 %549, %v275_v1   ;;  %299 = vperm.xlu0 %548, %v273_v2   ;;  %v278_v5 = vld [vmem:[%s958_s2 + $0x8] sm:$0xff]  ;;  %v280_v7 = vld [vmem:[%s958_s2 + $0x18] sm:$0xff]  ;;  %v279_v8 = vld [vmem:[%s958_s2 + $0x10] sm:$0xff]  ;;  %s672_s28 = smov [#allocation5]  }
  0x3d   : > { %v844_v9 = vld [vmem:[%s813_s21] sm:$0xff]  ;;  %v847_v10 = vld [vmem:[%s813_s21 + $0x10] sm:$0xff]  ;;  %v850_v11 = vld [vmem:[%s813_s21 + $0x8] sm:$0xff]  ;;  %s588_s29 = sshll.u32 %s672_s28, 4  ;;  %s589_s29 = int_to_ptr.vmem [resolvable:$false] %s588_s29 }
  0x3e   : > { %v853_v12 = vld [vmem:[%s813_s21 + $0x18] sm:$0xff]  ;;  %v217_v13 = vadd.f32 %v847_v10, %v844_v9  ;;  %v235_v14 = vmul.f32 %v844_v9, %v844_v9  ;;  %v237_v15 = vmul.f32 %v847_v10, %v847_v10  ;;  %v862_v16 = vld [vmem:[%s813_s21 + $0x20] sm:$0xff]  ;;  %v236_v18 = vmul.f32 %v850_v11, %v850_v11  ;;  %v871_v20 = vld [vmem:[%s813_s21 + $0x28] sm:$0xff]  ;;  %s590_s30 = scalar_lea.vmem %s589_s29, 2048 }
  0x3f   : > { %v226_v17 = vadd.f32 %v853_v12, %v850_v11  ;;  %v238_v19 = vmul.f32 %v853_v12, %v853_v12  ;;  %v239_v22 = vmul.f32 %v862_v16, %v862_v16  ;;  %v877_v24 = vld [vmem:[%s813_s21 + $0x30] sm:$0xff]  ;;  %v240_v26 = vmul.f32 %v871_v20, %v871_v20  ;;  %v883_v28 = vld [vmem:[%s813_s21 + $0x38] sm:$0xff]  ;;  %s206_s21 = scalar_lea.vmem [#allocation5], %s472_s18 }
  0x40   : > { %314 = vperm.xlu1 %549, %v276_v3   ;;  %304 = vperm.xlu0 %548, %v274_v4   ;;  %v218_v21 = vadd.f32 %v217_v13, %v862_v16  ;;  %v243_v23 = vadd.f32 %v237_v15, %v235_v14  ;;  %v241_v30 = vmul.f32 %v877_v24, %v877_v24  ;;  %s377_s9 = sshll.u32 %s206_s21, 4  ;;  %s902_s9 = int_to_ptr.vmem [resolvable:$true] %s377_s9 }
  0x41   : > { %v227_v25 = vadd.f32 %v226_v17, %v871_v20  ;;  %v252_v27 = vadd.f32 %v238_v19, %v236_v18  ;;  %v242_v33 = vmul.f32 %v883_v28, %v883_v28  ;;  %s584_s24 = scalar_lea.vmem %s902_s9, 1024  ;;  %p591_p6 = scmp.lt.s32.totalorder %s902_s9, %s589_s29 }
  0x42   : > { %v219_v29 = vadd.f32 %v218_v21, %v877_v24  ;;  %v244_v31 = vadd.f32 %v243_v23, %v239_v22  ;;  %p585_p8 = scmp.ne.s32.totalorder %s902_s9, %s584_s24  ;;  %p592_p13 = scmp.lt.s32.totalorder %s590_s30, %s584_s24 }
  0x43   : > { %v228_v32 = vadd.f32 %v227_v25, %v883_v28  ;;  %v253_v34 = vadd.f32 %v252_v27, %v240_v26 }
  0x44   : > { %332 = vperm.xlu1 %549, %v278_v5   ;;  %327 = vperm.xlu0 %548, %v277_v6   ;;  %v220_v35 = vrot.slane %v219_v29, 4  ;;  %v245_v36 = vadd.f32 %v244_v31, %v241_v30  ;;  %p586_p11 = pnand %p585_p8, %p967_p9  ;;  %p593_p2 = por %p592_p13, %p591_p6 }
  0x45   : > { %v229_v37 = vrot.slane %v228_v32, 4  ;;  %v254_v38 = vadd.f32 %v253_v34, %v242_v33 }
  0x46   : > { %v221_v39 = vadd.f32 %v220_v35, %v219_v29  ;;  %v246_v40 = vrot.slane %v245_v36, 4  ;;  %p587_p0 = pneg %p586_p11 }
  0x47   : > { %v230_v41 = vadd.f32 %v229_v37, %v228_v32  ;;  %v255_v42 = vrot.slane %v254_v38, 4 }
  0x48   : > { %342 = vperm.xlu1 %549, %v280_v7   ;;  %337 = vperm.xlu0 %548, %v279_v8   ;;  %v222_v43 = vrot.slane %v221_v39, 2  ;;  %v247_v44 = vadd.f32 %v246_v40, %v245_v36  ;;  %p594_p5 = pnand %p593_p2, %p587_p0 }
  0x49   : > { %v231_v45 = vrot.slane %v230_v41, 2  ;;  %v256_v46 = vadd.f32 %v255_v42, %v254_v38 }
  0x4a   : > { %v223_v47 = vadd.f32 %v222_v43, %v221_v39  ;;  %v248_v48 = vrot.slane %v247_v44, 2 }
  0x4b   : > { %v232_v49 = vadd.f32 %v231_v45, %v230_v41  ;;  %v257_v50 = vrot.slane %v256_v46, 2 }
  0x4c   : > { %v224_v51 = vrot.slane %v223_v47, 1  ;;  %v249_v52 = vadd.f32 %v248_v48, %v247_v44 }
  0x4d   : > { %v233_v53 = vrot.slane %v232_v49, 1  ;;  %v258_v54 = vadd.f32 %v257_v50, %v256_v46 }
  0x4e   : > { %v225_v55 = vadd.f32 %v224_v51, %v223_v47  ;;  %v250_v56 = vrot.slane %v249_v52, 1 }
  0x4f   : > { %v234_v57 = vadd.f32 %v233_v53, %v232_v49  ;;  %v259_v58 = vrot.slane %v258_v54, 1 }
  0x50   : > { %v251_v59 = vadd.f32 %v250_v56, %v249_v52  ;;  %v261_v60 = vmul.f32 0.03125, %v225_v55 }
  0x51   : > { %v260_v61 = vadd.f32 %v259_v58, %v258_v54  ;;  %v262_v62 = vmul.f32 0.03125, %v234_v57 }
  0x52   : > { %v263_v63 = vmul.f32 0.03125, %v251_v59  ;;  %v265_v0 = vmul.f32 %v261_v60, %v261_v60  ;;  %v281_v8 = vsub.f32 %v844_v9, %v261_v60  ;;  %v283_v14 = vsub.f32 %v847_v10, %v261_v60 }
  0x53   : > { %v264_v1 = vmul.f32 0.03125, %v260_v61  ;;  %v266_v2 = vmul.f32 %v262_v62, %v262_v62  ;;  %v282_v13 = vsub.f32 %v850_v11, %v262_v62  ;;  %v284_v15 = vsub.f32 %v853_v12, %v262_v62 }
  0x54   : > { %v267_v3 = vsub.f32 %v263_v63, %v265_v0  ;;  %v285_v21 = vsub.f32 %v862_v16, %v261_v60  ;;  %v286_v22 = vsub.f32 %v871_v20, %v262_v62  ;;  %v287_v23 = vsub.f32 %v877_v24, %v261_v60 }
  0x55   : > { %v268_v4 = vsub.f32 %v264_v1, %v266_v2  ;;  %v288_v25 = vsub.f32 %v883_v28, %v262_v62 }
  0x56   : > { %v269_v5 = vadd.f32 1e-06, %v267_v3 }
  0x57   : > { %v270_v6 = vadd.f32 1e-06, %v268_v4 }
  0x58   : > { %550 = vrsqrt.f32 %v269_v5 }
  0x59   : > { %552 = vrsqrt.f32 %v270_v6 }
  0x62   : > { %v551_v7 = vpop.eup %550 }
  0x63   : > { %v553_v17 = vpop.eup %552  ;;  %v289_v26 = vmul.f32 %v551_v7, %v281_v8  ;;  %v291_v27 = vmul.f32 %v551_v7, %v283_v14  ;;  %v293_v30 = vmul.f32 %v551_v7, %v285_v21  ;;  %v295_v31 = vmul.f32 %v551_v7, %v287_v23 }
  0x64   : > { %v290_v9 = vmul.f32 %v553_v17, %v282_v13  ;;  %v292_v11 = vmul.f32 %v553_v17, %v284_v15  ;;  %v294_v12 = vmul.f32 %v553_v17, %v286_v22  ;;  %v296_v32 = vmul.f32 %v553_v17, %v288_v25 }
  0xbb   : > { %v310_v18 = vpop.permute.xlu1 %309  ;;  %v300_v19 = vpop.permute.xlu0 %299 }
  0xbc   : > { %v317_v33 = vmul.f32 %v300_v19, %v289_v26  ;;  %v318_v16 = vmul.f32 %v300_v19, %v290_v9  ;;  %v321_v39 = vmul.f32 %v310_v18, %v293_v30  ;;  %v322_v40 = vmul.f32 %v310_v18, %v294_v12 }
  0xbf   : > { %v315_v29 = vpop.permute.xlu1 %314  ;;  %v305_v10 = vpop.permute.xlu0 %304 }
  0xc0   : > { %v319_v34 = vmul.f32 %v305_v10, %v291_v27  ;;  %v320_v20 = vmul.f32 %v305_v10, %v292_v11  ;;  %v323_v41 = vmul.f32 %v315_v29, %v295_v31  ;;  %v324_v42 = vmul.f32 %v315_v29, %v296_v32 }
  0xc3   : > { %v333_v24 = vpop.permute.xlu1 %332  ;;  %v328_v28 = vpop.permute.xlu0 %327 }
  0xc4   : > { %v347_v35 = vadd.f32 %v333_v24, %v319_v34  ;;  %v348_v36 = vadd.f32 %v333_v24, %v320_v20  ;;  %v345_v37 = vadd.f32 %v328_v28, %v317_v33  ;;  %v346_v38 = vadd.f32 %v328_v28, %v318_v16 }
  0xc6   : > { %355 = vst [vmem:[%s206_s21 + $0x10] sm:$0xff] %v347_v35  ;;  %356 = vst [vmem:[%s206_s21 + $0x18] sm:$0xff] %v348_v36 }
  0xc7   : > { %353 = vst [vmem:[%s206_s21] sm:$0xff] %v345_v37  ;;  %354 = vst [vmem:[%s206_s21 + $0x8] sm:$0xff] %v346_v38  ;;  %v343_v43 = vpop.permute.xlu1 %342  ;;  %v338_v44 = vpop.permute.xlu0 %337 }
  0xc8   : > { %v351_v45 = vadd.f32 %v343_v43, %v323_v41  ;;  %v352_v46 = vadd.f32 %v343_v43, %v324_v42  ;;  %v349_v47 = vadd.f32 %v338_v44, %v321_v39  ;;  %v350_v48 = vadd.f32 %v338_v44, %v322_v40 }
  0xca   : > { %359 = vst [vmem:[%s206_s21 + $0x30] sm:$0xff] %v351_v45  ;;  %360 = vst [vmem:[%s206_s21 + $0x38] sm:$0xff] %v352_v46 }
  0xcb   : > { %357 = vst [vmem:[%s206_s21 + $0x20] sm:$0xff] %v349_v47  ;;  %358 = vst [vmem:[%s206_s21 + $0x28] sm:$0xff] %v350_v48 }
  0xcc   : > { %597 = shalt.err (!%p594_p5)
}
  0xcd   : > { %s598_s4 = scalar_lea.hbm %s907_s15, 1024  ;;  %s602_s19 = scalar_lea.hbm %s959_s3, 2048 }
  0xce   : > { %p599_p4 = scmp.ne.s32.totalorder %s907_s15, %s598_s4  ;;  %p603_p12 = scmp.lt.u32.totalorder %s907_s15, %s959_s3 }
  0xcf   : > { %p604_p1 = scmp.lt.u32.totalorder %s602_s19, %s598_s4  ;;  %p606_p8 = scmp.lt.u32.totalorder %s598_s4, %s907_s15 }
  0xd0   : > { %p600_p7 = pnand %p599_p4, %p967_p9 }
  0xd1   : > { %p605_p3 = por %p604_p1, %p603_p12 }
  0xd2   : > { %p601_p10 = pneg %p600_p7 }
  0xd3   : > { %p607_p11 = por %p606_p8, %p605_p3 }
  0xd5   : > { %p608_p0 = pnand %p607_p11, %p601_p10 }
  0xd7   : > { %611 = shalt.err (!%p608_p0)
}
  0xd8   : > { %s673_s21 = smov 256   ;;  %s674_s10 = smov 16  }
  0xd9   : > { %483 = dma.vmem_to_hbm [thread:$0]  (%p967_p9), %s902_s9, 1024, %s907_s15, %s362_s23, %s673_s21, %s673_s21, %s674_s10  }
  0xda PF: > { %s392_s18 = sand.u32 1, %s646_s12   ;;  %p968_p6 = scmp.ne.s32.totalorder %s964_s27, 0 }
  0xdb   : > { %p969_p13 = scmp.ge.s32.totalorder %s666_s17, 2  ;;  %s393_s22 = scalar_lea.sflag [#allocation4], %s392_s18 }
  0xdd   : > { %p490_p2 = pnand %p969_p13, %p968_p6 }
  0xdf   : > { %641 = dma.done.wait (!%p490_p2), %s393_s22, 1024  }
  0xe0   : > { %643 = vsyncadd (!%p490_p2), %s393_s22, 4294966272  ;;  %s19_s17 = sadd.s32 1, %s666_s17   ;;  %s970_s12 = smov %s650_s13 }
  0xe1   : > { %p16_p5 = scmp.ge.s32.totalorder %s19_s17, 4   ;;  %s971_s13 = smov %s654_s14 }
  0xe2   : > { %s972_s14 = smov %s751_s26  ;;  %s973_s15 = smov %s662_s16 }
  0xe3   : > { %s974_s16 = smov %s976_s20  ;;  %18 = sbr.rel (!%p16_p5) target bundleno = 6 (0x6), region = 77 }
  0xea   :  { %398 = vsyncpa [#allocation3], 1 }
  0xeb   :  { %400 = vsyncpa [#allocation3 + $0x1], 1 }
  0xec   :  { %401 = vsyncpa [#allocation4], 1 }
  0xed   :  { %403 = vsyncpa [#allocation4 + $0x1], 1 }

</bundles_post_ra>
